<compile_context>
chip_gen: v7x
topology: tpu7x:2x2x1
jax: 0.10.0
libtpu: 0.0.40
codegen_flags: <defaults>
</compile_context>

<pallas_src>
import jax
import jax.numpy as jnp
from jax.experimental import pallas as pl
from jax.experimental.pallas import tpu as pltpu

_SUBLANE = 8


def _divisors(n):
    ds = set()
    i = 1
    while i * i <= n:
        if n % i == 0:
            ds.add(i)
            ds.add(n // i)
        i += 1
    return sorted(ds)


def intra_attention_kernel(q_ref, k_ref, o_ref, m_sc, l_sc, acc_sc):
    # q_ref: (bt, H)   k_ref: (bt, ts, H)   o_ref: (bt, H)
    # scratch: m_sc (bt,1) f32, l_sc (bt,1) f32, acc_sc (bt,H) f32
    j = pl.program_id(1)

    @pl.when(j == 0)
    def _init():
        m_sc[...] = jnp.full_like(m_sc, -jnp.inf)
        l_sc[...] = jnp.zeros_like(l_sc)
        acc_sc[...] = jnp.zeros_like(acc_sc)

    q = q_ref[...].astype(jnp.float32)             # (bt, H) f32
    k = k_ref[...]                                 # (bt, ts, H), input dtype

    # scores[b, s] = sum_h key[b, s, h] * query[b, h]
    # Broadcast-multiply (promotes to f32) + lane reduce on the VPU/XLU;
    # the MXU is useless here (one GEMM dim is 1) and only adds relayouts.
    scores = jnp.sum(k * q[:, None, :], axis=-1)   # (bt, ts) f32

    # Online softmax over the sequence axis (== torch.softmax(dim=1)).
    m_prev = m_sc[...]
    m_new = jnp.maximum(m_prev, jnp.max(scores, axis=-1, keepdims=True))
    alpha = jnp.exp(m_prev - m_new)                # (bt, 1)
    p = jnp.exp(scores - m_new)                    # (bt, ts) f32
    l_sc[...] = alpha * l_sc[...] + jnp.sum(p, axis=-1, keepdims=True)
    # out[b, h] += sum_s p[b, s] * key[b, s, h]  (sublane reduce, f32 acc)
    acc_sc[...] = alpha * acc_sc[...] + jnp.sum(p[:, :, None] * k, axis=1)
    m_sc[...] = m_new

    @pl.when(j == pl.num_programs(1) - 1)
    def _finalize():
        denom = l_sc[...]
        r = pl.reciprocal(denom, approx=True)
        # One Newton refinement keeps full f32 accuracy for ~2 VPU ops on a
        # (bt,1) row (review flagged removal as optional; kept for the 1e-4
        # correctness check).
        r = r * (2.0 - denom * r)
        o_ref[...] = (acc_sc[...] * r).astype(o_ref.dtype)


def intra_attention(query, key, mask=None):
    """query: (B, H), key: (B, S, H) -> (B, H).

    `mask` is accepted for API parity but (matching the reference module's
    actual behavior: the masked_fill result is assigned to `mask` and never
    used) has no effect on the output.
    """
    del mask  # reference forward never uses the masked scores
    B, S, H = key.shape
    assert query.shape == (B, H)
    out_dtype = query.dtype
    k_bytes = jnp.dtype(key.dtype).itemsize
    q_bytes = jnp.dtype(query.dtype).itemsize
    o_bytes = jnp.dtype(out_dtype).itemsize

    # Generation-aware VMEM budget (v5e/v6e: 128 MiB physical, v7x: 64 MiB).
    vmem_cap = 64 * 1024 * 1024
    try:
        info = pltpu.get_tpu_info()
        vmem_cap = int(getattr(info, "vmem_capacity_bytes", vmem_cap)) or vmem_cap
    except Exception:
        pass
    vmem_limit = min(vmem_cap * 3 // 4, 100 * 1024 * 1024)
    budget = int(vmem_limit * 0.85)

    # Legal tile sizes: divisors of B / S so there are never partial tiles
    # (no HBM pad/copy of `key`).  Second-minor block dims must be multiples
    # of 8 or equal to the full dim; the lane dim is always the full H.
    valid_bt = [d for d in _divisors(B) if d % _SUBLANE == 0 or d == B]
    valid_ts = [d for d in _divisors(S) if d % _SUBLANE == 0 or d == S]

    def step_bytes(bt, ts):
        key_block = bt * ts * H * k_bytes
        return (2 * key_block                        # double-buffered key block
                + 2 * bt * H * (q_bytes + o_bytes)   # double-buffered q / out blocks
                + bt * (H + 2) * 4                   # f32 acc / m / l scratch
                + 2 * bt * ts * H * 4                # transient f32 products
                + 2 * bt * ts * 4)                   # scores / probs

    choice = None
    for ts in sorted(valid_ts, reverse=True):        # prefer a single S pass
        fitting = [bt for bt in valid_bt if step_bytes(bt, ts) <= budget]
        if fitting:
            # Prefer >=2 batch steps (megacore sharding + DMA/compute overlap)
            # as long as each step still carries >= 8 batch rows.
            multi = [bt for bt in fitting if B // bt >= 2 and bt >= _SUBLANE]
            bt = max(multi) if multi else max(fitting)
            choice = (bt, ts)
            break
    if choice is None:
        # Pathological shapes (huge S*H with indivisible B/S): take the
        # smallest legal tile and raise the scoped limit to fit it.
        choice = (min(valid_bt), min(valid_ts))
        vmem_limit = max(vmem_limit, int(step_bytes(*choice) * 1.25))
    bt, ts = choice

    grid = (B // bt, S // ts)

    cost = pl.CostEstimate(
        flops=4 * B * S * H,
        transcendentals=B * (S + grid[1]),
        bytes_accessed=B * S * H * k_bytes + B * H * q_bytes + B * H * o_bytes,
    )

    return pl.pallas_call(
        intra_attention_kernel,
        out_shape=jax.ShapeDtypeStruct((B, H), out_dtype),
        grid=grid,
        in_specs=[
            pl.BlockSpec((bt, H), lambda i, j: (i, 0)),
            pl.BlockSpec((bt, ts, H), lambda i, j: (i, j, 0)),
        ],
        out_specs=pl.BlockSpec((bt, H), lambda i, j: (i, 0)),
        scratch_shapes=[
            pltpu.VMEM((bt, 1), jnp.float32),    # running max m
            pltpu.VMEM((bt, 1), jnp.float32),    # running denom l
            pltpu.VMEM((bt, H), jnp.float32),    # running weighted key sum
        ],
        compiler_params=pltpu.CompilerParams(
            dimension_semantics=("parallel", "arbitrary"),
            vmem_limit_bytes=int(vmem_limit),
        ),
        cost_estimate=cost,
    )(query, key)


def init_params(hidden_size, key):
    """Deterministic init of the (unused-in-forward) w1/w2/w3 Linear weights."""
    k1, k2, k3 = jax.random.split(key, 3)
    bound = 1.0 / jnp.sqrt(hidden_size)
    # TODO(synk): w1/w2/w3 are declared in __init__ but never used in forward;
    # kept here only for shape/parameter parity.
    return {
        "w1": jax.random.uniform(k1, (1, hidden_size), jnp.float32, -bound, bound),
        "w2": jax.random.uniform(k2, (hidden_size, hidden_size), jnp.float32, -bound, bound),
        "w3": jax.random.uniform(k3, (hidden_size, hidden_size), jnp.float32, -bound, bound),
    }


def reference(query, key):
    scores = jnp.einsum("bsh,bh->bs", key, query)
    attn = jax.nn.softmax(scores, axis=1)
    return jnp.einsum("bs,bsh->bh", attn, key)


if __name__ == "__main__":
    B, S, H = 2, 8, 32
    root = jax.random.PRNGKey(0)
    kq, kk, kp, km = jax.random.split(root, 4)

    query = jax.random.normal(kq, (B, H), dtype=jnp.float32)
    key = jax.random.normal(kk, (B, S, H), dtype=jnp.float32)
    mask = (jax.random.uniform(km, (B, S)) > 0.2).astype(jnp.int32)  # unused (parity)

    _ = init_params(H, kp)  # parameters exist but do not affect forward

    out = intra_attention(query, key, mask)
    out = jax.block_until_ready(out)

    ref = reference(query, key)
    assert out.shape == (B, H)
    # Small slack vs 1e-5: accumulation order differs from the XLA ref.
    assert jnp.allclose(out, ref, atol=1e-4, rtol=1e-4), "mismatch vs reference"

    print("KERNEL_OK")
</pallas_src>

<mosaic_0001>
module attributes {stable_mosaic.version = 11 : i64} {
  func.func @intra_attention_kernel(%arg0: i32, %arg1: i32, %arg2: memref<2x32xf32, #tpu.memory_space<vmem>>, %arg3: memref<2x8x32xf32, #tpu.memory_space<vmem>>, %arg4: memref<2x32xf32, #tpu.memory_space<vmem>>, %arg5: memref<2x1xf32, #tpu.memory_space<vmem>>, %arg6: memref<2x1xf32, #tpu.memory_space<vmem>>, %arg7: memref<2x32xf32, #tpu.memory_space<vmem>>) attributes {dimension_semantics = [#tpu.dimension_semantics<parallel>, #tpu.dimension_semantics<arbitrary>], iteration_bounds = array<i64: 1, 1>, scalar_prefetch = 0 : i64, scratch_operands = 3 : i64, tpu.core_type = #tpu.core_type<tc>, window_params = [{transform_indices = @transform_0, window_bounds = array<i64: 2, 32>}, {transform_indices = @transform_1, window_bounds = array<i64: 2, 8, 32>}, {transform_indices = @transform_2, window_bounds = array<i64: 2, 32>}]} {
    %c0_i32 = arith.constant 0 : i32
    %0 = arith.cmpi eq, %arg1, %c0_i32 : i32
    %1 = arith.extui %0 : i1 to i32
    %c0_i32_0 = arith.constant 0 : i32
    %2 = arith.cmpi ne, %1, %c0_i32_0 : i32
    scf.if %2 {
      %cst_22 = arith.constant 0xFF800000 : f32
      %37 = vector.broadcast %cst_22 : f32 to vector<2x1xf32>
      %c0_23 = arith.constant 0 : index
      %c0_24 = arith.constant 0 : index
      %38 = vector.load %arg5[%c0_23, %c0_24] : memref<2x1xf32, #tpu.memory_space<vmem>>, vector<2x1xf32>
      tpu.vector_store %arg5[%c0_23, %c0_24], %37 {strides = array<i32>} : memref<2x1xf32, #tpu.memory_space<vmem>>, vector<2x1xf32>,
      %cst_25 = arith.constant 0.000000e+00 : f32
      %39 = vector.broadcast %cst_25 : f32 to vector<2x1xf32>
      %c0_26 = arith.constant 0 : index
      %c0_27 = arith.constant 0 : index
      %40 = vector.load %arg6[%c0_26, %c0_27] : memref<2x1xf32, #tpu.memory_space<vmem>>, vector<2x1xf32>
      tpu.vector_store %arg6[%c0_26, %c0_27], %39 {strides = array<i32>} : memref<2x1xf32, #tpu.memory_space<vmem>>, vector<2x1xf32>,
      %cst_28 = arith.constant 0.000000e+00 : f32
      %41 = vector.broadcast %cst_28 : f32 to vector<2x32xf32>
      %c0_29 = arith.constant 0 : index
      %c0_30 = arith.constant 0 : index
      %42 = vector.load %arg7[%c0_29, %c0_30] : memref<2x32xf32, #tpu.memory_space<vmem>>, vector<2x32xf32>
      tpu.vector_store %arg7[%c0_29, %c0_30], %41 {strides = array<i32>} : memref<2x32xf32, #tpu.memory_space<vmem>>, vector<2x32xf32>,
    } else {
    }
    %c0 = arith.constant 0 : index
    %c0_1 = arith.constant 0 : index
    %3 = vector.load %arg2[%c0, %c0_1] : memref<2x32xf32, #tpu.memory_space<vmem>>, vector<2x32xf32>
    %c0_2 = arith.constant 0 : index
    %c0_3 = arith.constant 0 : index
    %c0_4 = arith.constant 0 : index
    %4 = vector.load %arg3[%c0_2, %c0_3, %c0_4] : memref<2x8x32xf32, #tpu.memory_space<vmem>>, vector<2x8x32xf32>
    %5 = vector.shape_cast %3 : vector<2x32xf32> to vector<2x1x32xf32>
    %6 = vector.broadcast %5 : vector<2x1x32xf32> to vector<2x8x32xf32>
    %7 = arith.mulf %4, %6 : vector<2x8x32xf32>
    %cst = arith.constant dense<0.000000e+00> : vector<2x8xf32>
    %8 = vector.multi_reduction <add>, %7, %cst [2] : vector<2x8x32xf32> to vector<2x8xf32>
    %c0_5 = arith.constant 0 : index
    %c0_6 = arith.constant 0 : index
    %9 = vector.load %arg5[%c0_5, %c0_6] : memref<2x1xf32, #tpu.memory_space<vmem>>, vector<2x1xf32>
    %cst_7 = arith.constant dense<0xFF800000> : vector<2xf32>
    %10 = vector.multi_reduction <maximumf>, %8, %cst_7 [1] : vector<2x8xf32> to vector<2xf32>
    %11 = vector.shape_cast %10 : vector<2xf32> to vector<2x1xf32>
    %12 = arith.maximumf %9, %11 : vector<2x1xf32>
    %13 = arith.subf %9, %12 : vector<2x1xf32>
    %14 = math.exp %13 : vector<2x1xf32>
    %15 = vector.broadcast %12 : vector<2x1xf32> to vector<2x8xf32>
    %16 = arith.subf %8, %15 : vector<2x8xf32>
    %17 = math.exp %16 : vector<2x8xf32>
    %c0_8 = arith.constant 0 : index
    %c0_9 = arith.constant 0 : index
    %18 = vector.load %arg6[%c0_8, %c0_9] : memref<2x1xf32, #tpu.memory_space<vmem>>, vector<2x1xf32>
    %19 = arith.mulf %14, %18 : vector<2x1xf32>
    %cst_10 = arith.constant dense<0.000000e+00> : vector<2xf32>
    %20 = vector.multi_reduction <add>, %17, %cst_10 [1] : vector<2x8xf32> to vector<2xf32>
    %21 = vector.shape_cast %20 : vector<2xf32> to vector<2x1xf32>
    %22 = arith.addf %19, %21 : vector<2x1xf32>
    %c0_11 = arith.constant 0 : index
    %c0_12 = arith.constant 0 : index
    %23 = vector.load %arg6[%c0_11, %c0_12] : memref<2x1xf32, #tpu.memory_space<vmem>>, vector<2x1xf32>
    tpu.vector_store %arg6[%c0_11, %c0_12], %22 {strides = array<i32>} : memref<2x1xf32, #tpu.memory_space<vmem>>, vector<2x1xf32>,
    %c0_13 = arith.constant 0 : index
    %c0_14 = arith.constant 0 : index
    %24 = vector.load %arg7[%c0_13, %c0_14] : memref<2x32xf32, #tpu.memory_space<vmem>>, vector<2x32xf32>
    %25 = vector.broadcast %14 : vector<2x1xf32> to vector<2x32xf32>
    %26 = arith.mulf %25, %24 : vector<2x32xf32>
    %27 = vector.shape_cast %17 : vector<2x8xf32> to vector<2x8x1xf32>
    %28 = vector.broadcast %27 : vector<2x8x1xf32> to vector<2x8x32xf32>
    %29 = arith.mulf %28, %4 : vector<2x8x32xf32>
    %cst_15 = arith.constant dense<0.000000e+00> : vector<2x32xf32>
    %30 = vector.multi_reduction <add>, %29, %cst_15 [1] : vector<2x8x32xf32> to vector<2x32xf32>
    %31 = arith.addf %26, %30 : vector<2x32xf32>
    %c0_16 = arith.constant 0 : index
    %c0_17 = arith.constant 0 : index
    %32 = vector.load %arg7[%c0_16, %c0_17] : memref<2x32xf32, #tpu.memory_space<vmem>>, vector<2x32xf32>
    tpu.vector_store %arg7[%c0_16, %c0_17], %31 {strides = array<i32>} : memref<2x32xf32, #tpu.memory_space<vmem>>, vector<2x32xf32>,
    %c0_18 = arith.constant 0 : index
    %c0_19 = arith.constant 0 : index
    %33 = vector.load %arg5[%c0_18, %c0_19] : memref<2x1xf32, #tpu.memory_space<vmem>>, vector<2x1xf32>
    tpu.vector_store %arg5[%c0_18, %c0_19], %12 {strides = array<i32>} : memref<2x1xf32, #tpu.memory_space<vmem>>, vector<2x1xf32>,
    %c0_i32_20 = arith.constant 0 : i32
    %34 = arith.cmpi eq, %arg1, %c0_i32_20 : i32
    %35 = arith.extui %34 : i1 to i32
    %c0_i32_21 = arith.constant 0 : i32
    %36 = arith.cmpi ne, %35, %c0_i32_21 : i32
    scf.if %36 {
      %c0_22 = arith.constant 0 : index
      %c0_23 = arith.constant 0 : index
      %37 = vector.load %arg6[%c0_22, %c0_23] : memref<2x1xf32, #tpu.memory_space<vmem>>, vector<2x1xf32>
      %38 = tpu.reciprocal %37 {approx = true} : vector<2x1xf32> -> vector<2x1xf32>
      %39 = arith.mulf %37, %38 : vector<2x1xf32>
      %cst_24 = arith.constant 2.000000e+00 : f32
      %40 = vector.broadcast %cst_24 : f32 to vector<2x1xf32>
      %41 = arith.subf %40, %39 : vector<2x1xf32>
      %42 = arith.mulf %38, %41 : vector<2x1xf32>
      %c0_25 = arith.constant 0 : index
      %c0_26 = arith.constant 0 : index
      %43 = vector.load %arg7[%c0_25, %c0_26] : memref<2x32xf32, #tpu.memory_space<vmem>>, vector<2x32xf32>
      %44 = vector.broadcast %42 : vector<2x1xf32> to vector<2x32xf32>
      %45 = arith.mulf %43, %44 : vector<2x32xf32>
      %c0_27 = arith.constant 0 : index
      %c0_28 = arith.constant 0 : index
      %46 = vector.load %arg4[%c0_27, %c0_28] : memref<2x32xf32, #tpu.memory_space<vmem>>, vector<2x32xf32>
      tpu.vector_store %arg4[%c0_27, %c0_28], %45 {strides = array<i32>} : memref<2x32xf32, #tpu.memory_space<vmem>>, vector<2x32xf32>,
    } else {
    }
    return
  }
  func.func @transform_0(%arg0: i32, %arg1: i32) -> (i32, i32) {
    %c0_i32 = arith.constant 0 : i32
    %c0_i32_0 = arith.constant 0 : i32
    return %arg0, %c0_i32 : i32, i32
  }
  func.func @transform_1(%arg0: i32, %arg1: i32) -> (i32, i32, i32) {
    %c0_i32 = arith.constant 0 : i32
    %c0_i32_0 = arith.constant 0 : i32
    return %arg0, %arg1, %c0_i32 : i32, i32, i32
  }
  func.func @transform_2(%arg0: i32, %arg1: i32) -> (i32, i32) {
    %c0_i32 = arith.constant 0 : i32
    %c0_i32_0 = arith.constant 0 : i32
    return %arg0, %c0_i32 : i32, i32
  }
}

</mosaic_0001>

<bundles_post_ra>
// kernel: tpu_custom_call.1
= control target key start
LH: loop header
LB: loop body
LE: loop exit
PB: predicated region body
PF: predicated region fallthrough
CT: control target
= control target key end

     0   :  { %7 = vsyncpa [#allocation6], 0  ;;  %s402_s0 = inlined_call_operand.hbm [shape: f32[2,32], index: 0, kind: input, shape index: {}]   ;;  %s403_s1 = inlined_call_operand.hbm [shape: f32[2,8,32], index: 1, kind: input, shape index: {}]   ;;  %s404_s2 = inlined_call_operand.hbm [shape: f32[2,32], index: 2, kind: output, shape index: {}]  }
   0x1   :  { %8 = vsyncpa [#allocation9], 0 }
   0x2   :  { %9 = vsyncpa [#allocation7], 0  ;;  %s319_s9 = smov [#allocation5]   ;;  %s320_s11 = smov [#allocation8]  }
   0x3   :  { %s16_s10 = sshll.u32 %s319_s9, 4  ;;  %s25_s12 = sshll.u32 %s320_s11, 4  ;;  %s17_s10 = int_to_ptr.vmem [resolvable:$true] %s16_s10  ;;  %s343_s12 = int_to_ptr.vmem [resolvable:$true] %s25_s12 }
   0x4   :  { %s247_s15 = scalar_lea.hbm %s402_s0, 32 }
   0x5   :  { %p248_p0 = scmp.ne.s32.totalorder %s402_s0, %s247_s15  ;;  %p251_p1 = scmp.lt.u32.totalorder %s247_s15, %s402_s0 }
   0x7   :  { %p253_p2 = pnand %p251_p1, %p248_p0 }
   0x9   :  { %256 = shalt.err (!%p253_p2)
}
   0xa   :  { %s257_s20 = scalar_lea.vmem %s17_s10, 32  ;;  %p262_p4 = scmp.lt.s32.totalorder %s17_s10, %s17_s10 }
   0xb   :  { %p258_p3 = scmp.ne.s32.totalorder %s17_s10, %s257_s20  ;;  %p263_p5 = scmp.lt.s32.totalorder %s257_s20, %s257_s20 }
   0xd   :  { %p264_p6 = por %p263_p5, %p262_p4 }
   0xf   :  { %p265_p7 = pnand %p264_p6, %p258_p3 }
  0x11   :  { %268 = shalt.err (!%p265_p7)
}
  0x12   :  { %19 = dma.hbm_to_vmem [thread:$0]  %s402_s0, 32, %s17_s10, [#allocation6]  }
  0x13   :  { %s269_s25 = scalar_lea.hbm %s403_s1, 256 }
  0x14   :  { %p270_p8 = scmp.ne.s32.totalorder %s403_s1, %s269_s25  ;;  %p273_p9 = scmp.lt.u32.totalorder %s269_s25, %s403_s1 }
  0x16   :  { %p275_p10 = pnand %p273_p9, %p270_p8 }
  0x18   :  { %278 = shalt.err (!%p275_p10)
}
  0x19   :  { %s279_s30 = scalar_lea.vmem %s343_s12, 256  ;;  %p284_p12 = scmp.lt.s32.totalorder %s343_s12, %s343_s12 }
  0x1a   :  { %p280_p11 = scmp.ne.s32.totalorder %s343_s12, %s279_s30  ;;  %p285_p13 = scmp.lt.s32.totalorder %s279_s30, %s279_s30 }
  0x1c   :  { %p286_p0 = por %p285_p13, %p284_p12 }
  0x1e   :  { %p287_p1 = pnand %p286_p0, %p280_p11 }
  0x20   :  { %290 = shalt.err (!%p287_p1)
}
  0x21   :  { %s321_s0 = smov 128   ;;  %s322_s3 = smov 8  }
  0x22   :  { %31 = dma.hbm_to_vmem [thread:$0]  %s403_s1, 256, %s343_s12, [#allocation9], %s321_s0, %s321_s0, %s322_s3  }
  0x23   :  { %313 = dma.done.wait [#allocation6], 32  }
  0x24   :  { %314 = vsyncadd [#allocation6], 4294967264 }
  0x25   :  { %315 = dma.done.wait [#allocation9], 256  }
  0x26   :  { %316 = vsyncadd [#allocation9], 4294967040  ;;  %v62_v0 = vlaneseq  ;;  %v323_v1 = vmov 1966171168   ;;  %v48_v10 = vld [vmem:[#allocation8] sm:$0xff]  ;;  %vm85_vm0 = vcmask 261120  }
  0x27   :  { %v60_v2 = vunpack.c.l.s4 %v323_v1  ;;  %v227_v7 = vld.sshfl [vmem:[#allocation5] sm:$0x11 pattern:$0x75316420]  ;;  %v49_v13 = vld [vmem:[#allocation8 + $0x8] sm:$0xff]  ;;  %vm42_vm1 = vcmask 1024  }
  0x28   :  { %v63_v3 = vshrl.u32 %v62_v0, 7  ;;  %v58_v9 = vcombine.high %v227_v7, %v227_v7  ;;  %v324_v19 = vmov -inf   ;;  %v96_v20 = vand.u32 127, %v62_v0  ;;  %s327_s1 = smov [#allocation10]  }
  0x29   :  { %v61_v4 = vunpack.c.0.s8 %v60_v2  ;;  %43 = vst.msk [vmem:[#allocation2] sm:$0x3] %vm42_vm1, %v324_v19  ;;  %vm105_vm2 = vcmask 1041409   ;;  %vm108_vm3 = vcmask 58368   ;;  %v325_v28 = vmov 0   ;;  %s217_s6 = sshll.u32 %s327_s1, 4  ;;  %s218_s6 = int_to_ptr.vmem [resolvable:$true] %s217_s6 }
  0x2a   :  { %v75_v6 = vsub.s32 0, %v63_v3  ;;  %v99_v22 = vsub.s32 %v96_v20, %v63_v3  ;;  %237 = vset.pattern.permute.xlu1 %v325_v28  ;;  %238 = vset.pattern.permute.xlu0 %v325_v28  ;;  %v326_v29 = vmov 0.0   ;;  %v126_v34 = vsub.s32 1, %v63_v3  ;;  %s291_s7 = scalar_lea.vmem %s218_s6, 32  ;;  %p296_p3 = scmp.lt.s32.totalorder %s218_s6, %s218_s6 }
  0x2b   :  { %v64_v5 = vsub.s32 %v61_v4, %v63_v3  ;;  %44 = vst.msk [vmem:[#allocation3] sm:$0x3] %vm42_vm1, %v326_v29  ;;  %vm45_vm4 = vcmask 254976   ;;  %p292_p2 = scmp.ne.s32.totalorder %s218_s6, %s291_s7  ;;  %p297_p4 = scmp.lt.s32.totalorder %s291_s7, %s291_s7 }
  0x2c   :  { %46 = vst.msk [vmem:[#allocation4] sm:$0x3] %vm45_vm4, %v326_v29 }
  0x2d   :  { %v65_v8 = vrot.slane %v227_v7, %v64_v5  ;;  %v72_v12 = vrot.slane %v58_v9, %v64_v5  ;;  %p298_p5 = por %p297_p4, %p296_p3 }
  0x2f   :  { %v76_v11 = vrot.slane %v65_v8, %v75_v6  ;;  %v80_v15 = vrot.slane %v72_v12, %v75_v6  ;;  %p299_p6 = pnand %p298_p5, %p292_p2 }
  0x30   :  { %v92_v30 = vld [vmem:[#allocation2] sm:$0x3] }
  0x31   :  { %v83_v14 = vmul.f32 %v76_v11, %v48_v10  ;;  %v84_v17 = vmul.f32 %v80_v15, %v49_v13 }
  0x32   :  { %v136_v9 = vld [vmem:[#allocation3] sm:$0x3] }
  0x33   :  { %v86_v16 = vsel %vm85_vm0, %v83_v14, 0.0  ;;  %v89_v18 = vsel %vm85_vm0, %v84_v17, 0.0  ;;  %v162_v2 = vld [vmem:[#allocation4] sm:$0x3] }
  0x34   :  { %87 = vadd.xlane.f32.xlu0 %v86_v16 }
  0x38   :  { %90 = vadd.xlane.f32.xlu0 %v89_v18 }
  0xc1   :  { %v88_v21 = vpop.xlane.xlu0 %87 }
  0xc2   :  { %v100_v24 = vrot.slane %v88_v21, %v99_v22 }
  0xc5   :  { %v91_v23 = vpop.xlane.xlu0 %90 }
  0xc6   :  { %v104_v25 = vrot.slane %v91_v23, %v99_v22 }
  0xc8   :  { %v106_v26 = vsel %vm105_vm2, %v104_v25, %v100_v24 }
  0xc9   :  { %v109_v27 = vsel %vm108_vm3, %v106_v26, -inf }
  0xca   :  { %110 = vmax.xlane.f32.xlu1 %v109_v27 }
 0x157   :  { %v111_v31 = vpop.xlane.xlu1 %110 }
 0x158   :  { %v112_v32 = vmax.f32 %v92_v30, %v111_v31 }
 0x15a   :  { %v113_v33 = vsub.f32 %v92_v30, %v112_v32  ;;  %194 = vst.msk [vmem:[#allocation2] sm:$0x3] %vm42_vm1, %v112_v32  ;;  %118 = vperm.xlu1 %237, %v112_v32  }
 0x15c   :  { %v114_v42 = vmul.f32 1.442695, %v113_v33 }
 0x1d9   :  { %v119_v35 = vpop.permute.xlu1 %118 }
 0x1da   :  { %v123_v36 = vrot.slane %v119_v35, %v75_v6  ;;  %v127_v37 = vrot.slane %v119_v35, %v126_v34 }
 0x1dc   :  { %v130_v38 = vsub.f32 %v88_v21, %v123_v36  ;;  %v131_v39 = vsub.f32 %v91_v23, %v127_v37 }
 0x1de   :  { %v132_v40 = vmul.f32 1.442695, %v130_v38  ;;  %v134_v41 = vmul.f32 1.442695, %v131_v39 }
 0x1e0   :  { %239 = vpow2.f32 %v132_v40 }
 0x1e1   :  { %241 = vpow2.f32 %v134_v41 }
 0x1e2   :  { %243 = vpow2.f32 %v114_v42 }
 0x1ea   :  { %v240_v43 = vpop.eup %239 }
 0x1eb   :  { %v242_v44 = vpop.eup %241  ;;  %141 = vperm.xlu0 %238, %v240_v43  }
 0x1ec   :  { %144 = vperm.xlu1 %237, %v242_v44   ;;  %v244_v45 = vpop.eup %243 }
 0x1ef   :  { %165 = vperm.xlu0 %238, %v244_v45  }
 0x26a   :  { %v142_v46 = vpop.permute.xlu0 %141 }
 0x26b   :  { %v145_v47 = vpop.permute.xlu1 %144  ;;  %v149_v48 = vrot.slane %v142_v46, %v99_v22  ;;  %v171_v49 = vmul.f32 %v142_v46, %v48_v10  ;;  %v137_v10 = vmul.f32 %v244_v45, %v136_v9 }
 0x26c   :  { %v153_v50 = vrot.slane %v145_v47, %v99_v22  ;;  %v172_v51 = vmul.f32 %v145_v47, %v49_v13 }
 0x26d   :  { %v173_v52 = vsel %vm85_vm0, %v171_v49, 0.0 }
 0x26e   :  { %v180_v53 = vsel %vm85_vm0, %v172_v51, 0.0  ;;  %v174_v54 = vrot.slane %v173_v52, 4  ;;  %v154_v55 = vsel %vm105_vm2, %v153_v50, %v149_v48  ;;  %v166_v3 = vpop.permute.xlu0 %165 }
 0x26f   :  { %v181_v56 = vrot.slane %v180_v53, 4  ;;  %v156_v57 = vsel %vm108_vm3, %v154_v55, 0.0  ;;  %v168_v6 = vmul.f32 %v166_v3, %v162_v2 }
 0x270   :  { %v175_v58 = vadd.f32 %v174_v54, %v173_v52  ;;  %157 = vadd.xlane.f32.xlu1 %v156_v57 }
 0x271   :  { %v182_v59 = vadd.f32 %v181_v56, %v180_v53 }
 0x272   :  { %v176_v60 = vrot.slane %v175_v58, 2 }
 0x273   :  { %v183_v61 = vrot.slane %v182_v59, 2 }
 0x274   :  { %v177_v62 = vadd.f32 %v176_v60, %v175_v58 }
 0x275   :  { %v184_v63 = vadd.f32 %v183_v61, %v182_v59 }
 0x276   :  { %v178_v0 = vrot.slane %v177_v62, 1 }
 0x277   :  { %v185_v1 = vrot.slane %v184_v63, 1 }
 0x278   :  { %v179_v4 = vadd.f32 %v178_v0, %v177_v62 }
 0x279   :  { %v186_v5 = vadd.f32 %v185_v1, %v184_v63 }
 0x27b   :  { %v189_v7 = vsel %vm105_vm2, %v186_v5, %v179_v4 }
 0x27c   :  { %v191_v8 = vadd.f32 %v189_v7, %v168_v6 }
 0x27e   :  { %193 = vst.msk [vmem:[#allocation4] sm:$0x3] %vm45_vm4, %v191_v8 }
 0x285   :  { %v203_v18 = vld [vmem:[#allocation4] sm:$0x3] }
 0x2fd   :  { %v158_v11 = vpop.xlane.xlu1 %157 }
 0x2fe   :  { %v159_v12 = vadd.f32 %v158_v11, %v137_v10 }
 0x300   :  { %161 = vst.msk [vmem:[#allocation3] sm:$0x3] %vm42_vm1, %v159_v12 }
 0x307   :  { %v198_v13 = vld [vmem:[#allocation3] sm:$0x3] }
 0x308   :  { %245 = vrcp.f32 %v198_v13 }
 0x312   :  { %v246_v14 = vpop.eup %245 }
 0x313   :  { %v200_v15 = vmul.f32 %v246_v14, %v198_v13 }
 0x315   :  { %v201_v16 = vsub.f32 2.0, %v200_v15 }
 0x317   :  { %v202_v17 = vmul.f32 %v246_v14, %v201_v16 }
 0x319   :  { %206 = vperm.xlu0 %238, %v202_v17  }
 0x398   :  { %v207_v19 = vpop.permute.xlu0 %206 }
 0x399   :  { %v209_v20 = vmul.f32 %v207_v19, %v203_v18 }
 0x39b   :  { %210 = vst.msk [vmem:[#allocation10] sm:$0x3] %vm45_vm4, %v209_v20 }
 0x39c   :  { %302 = shalt.err (!%p299_p6)
}
 0x39d   :  { %s303_s10 = scalar_lea.hbm %s404_s2, 32 }
 0x39e   :  { %p304_p7 = scmp.ne.s32.totalorder %s404_s2, %s303_s10  ;;  %p307_p8 = scmp.lt.u32.totalorder %s303_s10, %s404_s2 }
 0x3a0   :  { %p309_p9 = pnand %p307_p8, %p304_p7 }
 0x3a2   :  { %312 = shalt.err (!%p309_p9)
}
 0x3a3   :  { %220 = dma.vmem_to_hbm [thread:$0]  %s218_s6, 32, %s404_s2, [#allocation7]  }
 0x3a4   :  { %317 = dma.done.wait [#allocation7], 32  }
 0x3a5   :  { %318 = vsyncadd [#allocation7], 4294967264 }
 0x3a6   :  { %224 = vsyncpa [#allocation6], 1 }
 0x3a7   :  { %225 = vsyncpa [#allocation9], 1 }
 0x3a8   :  { %226 = vsyncpa [#allocation7], 1 }

</bundles_post_ra>
